<compile_context>
chip_gen: v5e
topology: v5e:2x2
jax: 0.10.0
libtpu: 0.0.40
codegen_flags: <defaults>
</compile_context>

<pallas_src>
import jax
import jax.numpy as jnp
from jax.experimental import pallas as pl
from jax.experimental.pallas import tpu as pltpu

F_IN = 28 * 28          # 784
F_PAD = 896             # 7 * 128 -> lane-dense first/last layers


def autoencoder_kernel(
    x_ref,
    w1_ref, b1_ref, w2_ref, b2_ref, w3_ref, b3_ref,   # encoder
    w4_ref, b4_ref,                                    # last_encoder_layer
    w5_ref, b5_ref, w6_ref, b6_ref, w7_ref, b7_ref, w8_ref, b8_ref,  # decoder
    y_ref, z_ref, w_ref,
):
    def lin(h, w_r, b_r):
        # MXU matmul, f32 accumulation; bias add in f32 on the VPU.
        return jnp.dot(h, w_r[...], preferred_element_type=jnp.float32) + b_r[...]

    x = x_ref[...]  # bf16, (TB, 896), padded columns are zero

    # encoder: Linear(784,128) ReLU Linear(128,64) ReLU Linear(64,12)
    h = jnp.maximum(lin(x, w1_ref, b1_ref), 0.0)                          # f32 (TB,128)
    h = jnp.maximum(lin(h.astype(jnp.bfloat16), w2_ref, b2_ref), 0.0)     # f32 (TB,64)
    y = lin(h, w3_ref, b3_ref)                                            # f32 (TB,12)
    y_ref[...] = y.astype(y_ref.dtype)

    # last_encoder_layer: ReLU Linear(12,3)  (tiny -> plain f32)
    z = lin(jnp.maximum(y, 0.0), w4_ref, b4_ref)                          # f32 (TB,3)
    z_ref[...] = z.astype(z_ref.dtype)

    # decoder: Linear(3,12) ReLU Linear(12,64) ReLU Linear(64,128) ReLU Linear(128,784) Tanh
    d = jnp.maximum(lin(z, w5_ref, b5_ref), 0.0)                          # f32 (TB,12)
    d = jnp.maximum(lin(d, w6_ref, b6_ref), 0.0)                          # f32 (TB,64)
    d = jnp.maximum(lin(d.astype(jnp.bfloat16), w7_ref, b7_ref), 0.0)     # f32 (TB,128)
    w = jnp.tanh(lin(d.astype(jnp.bfloat16), w8_ref, b8_ref))             # f32 (TB,896)
    w_ref[...] = w.astype(w_ref.dtype)


def autoencoder_forward(x, params, *, batch_tile=256):
    """x: (B, 784) float32.  params: PyTorch-layout (out,in) weights + (out,) biases.

    batch_tile=256 keeps the double-buffered activation slabs well under the
    v7x 32 MiB scoped-VMEM limit (weights ~0.5 MB bf16 + ~4x0.9 MB activation
    buffers) while filling the MXU M dimension on all generations.
    """
    B, F = x.shape
    assert F == F_IN

    # Round batch up to a multiple of 8, pick the tile, pad to a tile multiple.
    b8 = ((B + 7) // 8) * 8
    tb = min(batch_tile, b8)
    b_pad = ((B + tb - 1) // tb) * tb

    # Lane-dense, bf16 input slab (padded rows/cols are zero).
    x_pad = jnp.zeros((b_pad, F_PAD), jnp.bfloat16)
    x_pad = x_pad.at[:B, :F].set(x.astype(jnp.bfloat16))

    # Pre-transpose weights to (in, out).  Big layers (1,2,7,8) -> bf16;
    # tiny 12/3-wide layers stay f32.  Biases are (1, out) f32.
    bf16_layers = {1, 2, 7, 8}
    flat_args = []
    for i in range(1, 9):
        w = params[f"w{i}"].T                       # (in, out) f32
        b = params[f"b{i}"][None, :].astype(jnp.float32)
        if i == 1:   # pad input features 784 -> 896 with zero rows
            w = jnp.zeros((F_PAD, w.shape[1]), w.dtype).at[:F, :].set(w)
        if i == 8:   # pad output features 784 -> 896 with zero cols
            w = jnp.zeros((w.shape[0], F_PAD), w.dtype).at[:, :F].set(w)
            b = jnp.zeros((1, F_PAD), jnp.float32).at[:, :F].set(b)
        if i in bf16_layers:
            w = w.astype(jnp.bfloat16)
        flat_args.append(w)
        flat_args.append(b)

    grid = (b_pad // tb,)

    # Batch-tiled activation/output specs; constant index_map keeps every
    # weight/bias VMEM-resident across grid steps.
    x_spec = pl.BlockSpec((tb, F_PAD), lambda i: (i, 0))
    param_specs = [pl.BlockSpec(a.shape, lambda i: (0, 0)) for a in flat_args]
    out_specs = (
        pl.BlockSpec((tb, 12), lambda i: (i, 0)),
        pl.BlockSpec((tb, 3), lambda i: (i, 0)),
        pl.BlockSpec((tb, F_PAD), lambda i: (i, 0)),
    )
    out_shapes = (
        jax.ShapeDtypeStruct((b_pad, 12), jnp.float32),    # y
        jax.ShapeDtypeStruct((b_pad, 3), jnp.float32),     # z
        jax.ShapeDtypeStruct((b_pad, F_PAD), jnp.float32), # w (padded)
    )

    # Advisory cost estimate for the XLA scheduler.
    layer_dims = [(F_PAD, 128), (128, 64), (64, 12), (12, 3),
                  (3, 12), (12, 64), (64, 128), (128, F_PAD)]
    flops = 2 * b_pad * sum(k * n for k, n in layer_dims)
    bytes_accessed = (
        x_pad.size * x_pad.dtype.itemsize
        + sum(a.size * a.dtype.itemsize for a in flat_args)
        + b_pad * (12 + 3 + F_PAD) * 4
    )
    cost = pl.CostEstimate(flops=flops,
                           transcendentals=b_pad * F_PAD,     # tanh
                           bytes_accessed=bytes_accessed)

    y, z, w = pl.pallas_call(
        autoencoder_kernel,
        out_shape=out_shapes,
        grid=grid,
        in_specs=[x_spec] + param_specs,
        out_specs=out_specs,
        compiler_params=pltpu.CompilerParams(
            dimension_semantics=("parallel",)),
        cost_estimate=cost,
    )(x_pad, *flat_args)

    # Strip batch / feature padding.
    return y[:B], z[:B], w[:B, :F]


def init_params(key):
    """Deterministic synthetic init matching nn.Linear shapes (out, in) / (out,)."""
    dims = [
        (128, 784), (64, 128), (12, 64),            # encoder
        (3, 12),                                     # last_encoder_layer
        (12, 3), (64, 12), (128, 64), (784, 128),    # decoder
    ]
    params = {}
    for i, (out_f, in_f) in enumerate(dims, start=1):
        key, kw, kb = jax.random.split(key, 3)
        bound = 1.0 / jnp.sqrt(in_f)
        params[f"w{i}"] = jax.random.uniform(
            kw, (out_f, in_f), jnp.float32, -bound, bound)
        params[f"b{i}"] = jax.random.uniform(
            kb, (out_f,), jnp.float32, -bound, bound)
    return params


def reference_forward(x, p):
    """Pure-JAX f32 reference matching the PyTorch module."""
    def lin(h, w, b):
        return h @ w.T + b
    h = jax.nn.relu(lin(x, p["w1"], p["b1"]))
    h = jax.nn.relu(lin(h, p["w2"], p["b2"]))
    y = lin(h, p["w3"], p["b3"])
    z = lin(jax.nn.relu(y), p["w4"], p["b4"])
    d = jax.nn.relu(lin(z, p["w5"], p["b5"]))
    d = jax.nn.relu(lin(d, p["w6"], p["b6"]))
    d = jax.nn.relu(lin(d, p["w7"], p["b7"]))
    w = jnp.tanh(lin(d, p["w8"], p["b8"]))
    return y, z, w


if __name__ == "__main__":
    key = jax.random.PRNGKey(0)
    key, kx = jax.random.split(key)
    B = 8
    x = jax.random.normal(kx, (B, F_IN), jnp.float32)
    params = init_params(key)

    y, z, w = autoencoder_forward(x, params)
    jax.block_until_ready((y, z, w))

    y_ref, z_ref, w_ref = reference_forward(x, params)
    assert y.shape == (B, 12) and z.shape == (B, 3) and w.shape == (B, F_IN)
    # bf16 matmul inputs on the large layers -> relaxed tolerances vs the f32 reference.
    assert jnp.allclose(y, y_ref, atol=5e-2, rtol=5e-2)
    assert jnp.allclose(z, z_ref, atol=5e-2, rtol=5e-2)
    assert jnp.allclose(w, w_ref, atol=5e-2, rtol=5e-2)

    print("KERNEL_OK")
</pallas_src>

<mosaic_0001>
module attributes {stable_mosaic.version = 11 : i64} {
  func.func @autoencoder_kernel(%arg0: i32, %arg1: memref<8x896xbf16, #tpu.memory_space<vmem>>, %arg2: memref<896x128xbf16, #tpu.memory_space<vmem>>, %arg3: memref<1x128xf32, #tpu.memory_space<vmem>>, %arg4: memref<128x64xbf16, #tpu.memory_space<vmem>>, %arg5: memref<1x64xf32, #tpu.memory_space<vmem>>, %arg6: memref<64x12xf32, #tpu.memory_space<vmem>>, %arg7: memref<1x12xf32, #tpu.memory_space<vmem>>, %arg8: memref<12x3xf32, #tpu.memory_space<vmem>>, %arg9: memref<1x3xf32, #tpu.memory_space<vmem>>, %arg10: memref<3x12xf32, #tpu.memory_space<vmem>>, %arg11: memref<1x12xf32, #tpu.memory_space<vmem>>, %arg12: memref<12x64xf32, #tpu.memory_space<vmem>>, %arg13: memref<1x64xf32, #tpu.memory_space<vmem>>, %arg14: memref<64x128xbf16, #tpu.memory_space<vmem>>, %arg15: memref<1x128xf32, #tpu.memory_space<vmem>>, %arg16: memref<128x896xbf16, #tpu.memory_space<vmem>>, %arg17: memref<1x896xf32, #tpu.memory_space<vmem>>, %arg18: memref<8x12xf32, #tpu.memory_space<vmem>>, %arg19: memref<8x3xf32, #tpu.memory_space<vmem>>, %arg20: memref<8x896xf32, #tpu.memory_space<vmem>>) attributes {dimension_semantics = [#tpu.dimension_semantics<parallel>], iteration_bounds = array<i64: 1>, scalar_prefetch = 0 : i64, scratch_operands = 0 : i64, tpu.core_type = #tpu.core_type<tc>, window_params = [{transform_indices = @transform_0, window_bounds = array<i64: 8, 896>}, {pipeline_mode = #tpu.pipeline_mode<synchronous>, transform_indices = @transform_1, window_bounds = array<i64: 896, 128>}, {pipeline_mode = #tpu.pipeline_mode<synchronous>, transform_indices = @transform_2, window_bounds = array<i64: 1, 128>}, {pipeline_mode = #tpu.pipeline_mode<synchronous>, transform_indices = @transform_3, window_bounds = array<i64: 128, 64>}, {pipeline_mode = #tpu.pipeline_mode<synchronous>, transform_indices = @transform_4, window_bounds = array<i64: 1, 64>}, {pipeline_mode = #tpu.pipeline_mode<synchronous>, transform_indices = @transform_5, window_bounds = array<i64: 64, 12>}, {pipeline_mode = #tpu.pipeline_mode<synchronous>, transform_indices = @transform_6, window_bounds = array<i64: 1, 12>}, {pipeline_mode = #tpu.pipeline_mode<synchronous>, transform_indices = @transform_7, window_bounds = array<i64: 12, 3>}, {pipeline_mode = #tpu.pipeline_mode<synchronous>, transform_indices = @transform_8, window_bounds = array<i64: 1, 3>}, {pipeline_mode = #tpu.pipeline_mode<synchronous>, transform_indices = @transform_9, window_bounds = array<i64: 3, 12>}, {pipeline_mode = #tpu.pipeline_mode<synchronous>, transform_indices = @transform_10, window_bounds = array<i64: 1, 12>}, {pipeline_mode = #tpu.pipeline_mode<synchronous>, transform_indices = @transform_11, window_bounds = array<i64: 12, 64>}, {pipeline_mode = #tpu.pipeline_mode<synchronous>, transform_indices = @transform_12, window_bounds = array<i64: 1, 64>}, {pipeline_mode = #tpu.pipeline_mode<synchronous>, transform_indices = @transform_13, window_bounds = array<i64: 64, 128>}, {pipeline_mode = #tpu.pipeline_mode<synchronous>, transform_indices = @transform_14, window_bounds = array<i64: 1, 128>}, {pipeline_mode = #tpu.pipeline_mode<synchronous>, transform_indices = @transform_15, window_bounds = array<i64: 128, 896>}, {pipeline_mode = #tpu.pipeline_mode<synchronous>, transform_indices = @transform_16, window_bounds = array<i64: 1, 896>}, {transform_indices = @transform_17, window_bounds = array<i64: 8, 12>}, {transform_indices = @transform_18, window_bounds = array<i64: 8, 3>}, {transform_indices = @transform_19, window_bounds = array<i64: 8, 896>}]} {
    %c0 = arith.constant 0 : index
    %c0_0 = arith.constant 0 : index
    %0 = vector.load %arg1[%c0, %c0_0] : memref<8x896xbf16, #tpu.memory_space<vmem>>, vector<8x896xbf16>
    %c0_1 = arith.constant 0 : index
    %c0_2 = arith.constant 0 : index
    %1 = vector.load %arg2[%c0_1, %c0_2] : memref<896x128xbf16, #tpu.memory_space<vmem>>, vector<896x128xbf16>
    %cst = arith.constant dense<0.000000e+00> : vector<8x128xf32>
    %2 = tpu.matmul %0, %1, %cst {dimension_numbers = #tpu.dot_dimension_numbers<[1], [0], [0], [1], [0, 0, 1, 1], [], []>} : vector<8x896xbf16>, vector<896x128xbf16>, vector<8x128xf32> -> vector<8x128xf32>
    %c0_3 = arith.constant 0 : index
    %c0_4 = arith.constant 0 : index
    %3 = vector.load %arg3[%c0_3, %c0_4] : memref<1x128xf32, #tpu.memory_space<vmem>>, vector<1x128xf32>
    %4 = vector.broadcast %3 : vector<1x128xf32> to vector<8x128xf32>
    %5 = arith.addf %2, %4 : vector<8x128xf32>
    %cst_5 = arith.constant 0.000000e+00 : f32
    %6 = vector.broadcast %cst_5 : f32 to vector<8x128xf32>
    %7 = arith.maximumf %5, %6 : vector<8x128xf32>
    %8 = arith.truncf %7 : vector<8x128xf32> to vector<8x128xbf16>
    %c0_6 = arith.constant 0 : index
    %c0_7 = arith.constant 0 : index
    %9 = vector.load %arg4[%c0_6, %c0_7] : memref<128x64xbf16, #tpu.memory_space<vmem>>, vector<128x64xbf16>
    %cst_8 = arith.constant dense<0.000000e+00> : vector<8x64xf32>
    %10 = tpu.matmul %8, %9, %cst_8 {dimension_numbers = #tpu.dot_dimension_numbers<[1], [0], [0], [1], [0, 0, 1, 1], [], []>} : vector<8x128xbf16>, vector<128x64xbf16>, vector<8x64xf32> -> vector<8x64xf32>
    %c0_9 = arith.constant 0 : index
    %c0_10 = arith.constant 0 : index
    %11 = vector.load %arg5[%c0_9, %c0_10] : memref<1x64xf32, #tpu.memory_space<vmem>>, vector<1x64xf32>
    %12 = vector.broadcast %11 : vector<1x64xf32> to vector<8x64xf32>
    %13 = arith.addf %10, %12 : vector<8x64xf32>
    %cst_11 = arith.constant 0.000000e+00 : f32
    %14 = vector.broadcast %cst_11 : f32 to vector<8x64xf32>
    %15 = arith.maximumf %13, %14 : vector<8x64xf32>
    %c0_12 = arith.constant 0 : index
    %c0_13 = arith.constant 0 : index
    %16 = vector.load %arg6[%c0_12, %c0_13] : memref<64x12xf32, #tpu.memory_space<vmem>>, vector<64x12xf32>
    %cst_14 = arith.constant dense<0.000000e+00> : vector<8x12xf32>
    %17 = tpu.matmul %15, %16, %cst_14 {dimension_numbers = #tpu.dot_dimension_numbers<[1], [0], [0], [1], [0, 0, 1, 1], [], []>} : vector<8x64xf32>, vector<64x12xf32>, vector<8x12xf32> -> vector<8x12xf32>
    %c0_15 = arith.constant 0 : index
    %c0_16 = arith.constant 0 : index
    %18 = vector.load %arg7[%c0_15, %c0_16] : memref<1x12xf32, #tpu.memory_space<vmem>>, vector<1x12xf32>
    %19 = vector.broadcast %18 : vector<1x12xf32> to vector<8x12xf32>
    %20 = arith.addf %17, %19 : vector<8x12xf32>
    %c0_17 = arith.constant 0 : index
    %c0_18 = arith.constant 0 : index
    %21 = vector.load %arg18[%c0_17, %c0_18] : memref<8x12xf32, #tpu.memory_space<vmem>>, vector<8x12xf32>
    tpu.vector_store %arg18[%c0_17, %c0_18], %20 {strides = array<i32>} : memref<8x12xf32, #tpu.memory_space<vmem>>, vector<8x12xf32>,
    %cst_19 = arith.constant 0.000000e+00 : f32
    %22 = vector.broadcast %cst_19 : f32 to vector<8x12xf32>
    %23 = arith.maximumf %20, %22 : vector<8x12xf32>
    %c0_20 = arith.constant 0 : index
    %c0_21 = arith.constant 0 : index
    %24 = vector.load %arg8[%c0_20, %c0_21] : memref<12x3xf32, #tpu.memory_space<vmem>>, vector<12x3xf32>
    %cst_22 = arith.constant dense<0.000000e+00> : vector<8x3xf32>
    %25 = tpu.matmul %23, %24, %cst_22 {dimension_numbers = #tpu.dot_dimension_numbers<[1], [0], [0], [1], [0, 0, 1, 1], [], []>} : vector<8x12xf32>, vector<12x3xf32>, vector<8x3xf32> -> vector<8x3xf32>
    %c0_23 = arith.constant 0 : index
    %c0_24 = arith.constant 0 : index
    %26 = vector.load %arg9[%c0_23, %c0_24] : memref<1x3xf32, #tpu.memory_space<vmem>>, vector<1x3xf32>
    %27 = vector.broadcast %26 : vector<1x3xf32> to vector<8x3xf32>
    %28 = arith.addf %25, %27 : vector<8x3xf32>
    %c0_25 = arith.constant 0 : index
    %c0_26 = arith.constant 0 : index
    %29 = vector.load %arg19[%c0_25, %c0_26] : memref<8x3xf32, #tpu.memory_space<vmem>>, vector<8x3xf32>
    tpu.vector_store %arg19[%c0_25, %c0_26], %28 {strides = array<i32>} : memref<8x3xf32, #tpu.memory_space<vmem>>, vector<8x3xf32>,
    %c0_27 = arith.constant 0 : index
    %c0_28 = arith.constant 0 : index
    %30 = vector.load %arg10[%c0_27, %c0_28] : memref<3x12xf32, #tpu.memory_space<vmem>>, vector<3x12xf32>
    %cst_29 = arith.constant dense<0.000000e+00> : vector<8x12xf32>
    %31 = tpu.matmul %28, %30, %cst_29 {dimension_numbers = #tpu.dot_dimension_numbers<[1], [0], [0], [1], [0, 0, 1, 1], [], []>} : vector<8x3xf32>, vector<3x12xf32>, vector<8x12xf32> -> vector<8x12xf32>
    %c0_30 = arith.constant 0 : index
    %c0_31 = arith.constant 0 : index
    %32 = vector.load %arg11[%c0_30, %c0_31] : memref<1x12xf32, #tpu.memory_space<vmem>>, vector<1x12xf32>
    %33 = vector.broadcast %32 : vector<1x12xf32> to vector<8x12xf32>
    %34 = arith.addf %31, %33 : vector<8x12xf32>
    %cst_32 = arith.constant 0.000000e+00 : f32
    %35 = vector.broadcast %cst_32 : f32 to vector<8x12xf32>
    %36 = arith.maximumf %34, %35 : vector<8x12xf32>
    %c0_33 = arith.constant 0 : index
    %c0_34 = arith.constant 0 : index
    %37 = vector.load %arg12[%c0_33, %c0_34] : memref<12x64xf32, #tpu.memory_space<vmem>>, vector<12x64xf32>
    %cst_35 = arith.constant dense<0.000000e+00> : vector<8x64xf32>
    %38 = tpu.matmul %36, %37, %cst_35 {dimension_numbers = #tpu.dot_dimension_numbers<[1], [0], [0], [1], [0, 0, 1, 1], [], []>} : vector<8x12xf32>, vector<12x64xf32>, vector<8x64xf32> -> vector<8x64xf32>
    %c0_36 = arith.constant 0 : index
    %c0_37 = arith.constant 0 : index
    %39 = vector.load %arg13[%c0_36, %c0_37] : memref<1x64xf32, #tpu.memory_space<vmem>>, vector<1x64xf32>
    %40 = vector.broadcast %39 : vector<1x64xf32> to vector<8x64xf32>
    %41 = arith.addf %38, %40 : vector<8x64xf32>
    %cst_38 = arith.constant 0.000000e+00 : f32
    %42 = vector.broadcast %cst_38 : f32 to vector<8x64xf32>
    %43 = arith.maximumf %41, %42 : vector<8x64xf32>
    %44 = arith.truncf %43 : vector<8x64xf32> to vector<8x64xbf16>
    %c0_39 = arith.constant 0 : index
    %c0_40 = arith.constant 0 : index
    %45 = vector.load %arg14[%c0_39, %c0_40] : memref<64x128xbf16, #tpu.memory_space<vmem>>, vector<64x128xbf16>
    %cst_41 = arith.constant dense<0.000000e+00> : vector<8x128xf32>
    %46 = tpu.matmul %44, %45, %cst_41 {dimension_numbers = #tpu.dot_dimension_numbers<[1], [0], [0], [1], [0, 0, 1, 1], [], []>} : vector<8x64xbf16>, vector<64x128xbf16>, vector<8x128xf32> -> vector<8x128xf32>
    %c0_42 = arith.constant 0 : index
    %c0_43 = arith.constant 0 : index
    %47 = vector.load %arg15[%c0_42, %c0_43] : memref<1x128xf32, #tpu.memory_space<vmem>>, vector<1x128xf32>
    %48 = vector.broadcast %47 : vector<1x128xf32> to vector<8x128xf32>
    %49 = arith.addf %46, %48 : vector<8x128xf32>
    %cst_44 = arith.constant 0.000000e+00 : f32
    %50 = vector.broadcast %cst_44 : f32 to vector<8x128xf32>
    %51 = arith.maximumf %49, %50 : vector<8x128xf32>
    %52 = arith.truncf %51 : vector<8x128xf32> to vector<8x128xbf16>
    %c0_45 = arith.constant 0 : index
    %c0_46 = arith.constant 0 : index
    %53 = vector.load %arg16[%c0_45, %c0_46] : memref<128x896xbf16, #tpu.memory_space<vmem>>, vector<128x896xbf16>
    %cst_47 = arith.constant dense<0.000000e+00> : vector<8x896xf32>
    %54 = tpu.matmul %52, %53, %cst_47 {dimension_numbers = #tpu.dot_dimension_numbers<[1], [0], [0], [1], [0, 0, 1, 1], [], []>} : vector<8x128xbf16>, vector<128x896xbf16>, vector<8x896xf32> -> vector<8x896xf32>
    %c0_48 = arith.constant 0 : index
    %c0_49 = arith.constant 0 : index
    %55 = vector.load %arg17[%c0_48, %c0_49] : memref<1x896xf32, #tpu.memory_space<vmem>>, vector<1x896xf32>
    %56 = vector.broadcast %55 : vector<1x896xf32> to vector<8x896xf32>
    %57 = arith.addf %54, %56 : vector<8x896xf32>
    %58 = math.tanh %57 : vector<8x896xf32>
    %c0_50 = arith.constant 0 : index
    %c0_51 = arith.constant 0 : index
    %59 = vector.load %arg20[%c0_50, %c0_51] : memref<8x896xf32, #tpu.memory_space<vmem>>, vector<8x896xf32>
    tpu.vector_store %arg20[%c0_50, %c0_51], %58 {strides = array<i32>} : memref<8x896xf32, #tpu.memory_space<vmem>>, vector<8x896xf32>,
    return
  }
  func.func @transform_0(%arg0: i32) -> (i32, i32) {
    %c0_i32 = arith.constant 0 : i32
    %c0_i32_0 = arith.constant 0 : i32
    return %arg0, %c0_i32 : i32, i32
  }
  func.func @transform_1(%arg0: i32) -> (i32, i32) {
    %c0_i32 = arith.constant 0 : i32
    %c0_i32_0 = arith.constant 0 : i32
    %c0_i32_1 = arith.constant 0 : i32
    return %c0_i32, %c0_i32_0 : i32, i32
  }
  func.func @transform_2(%arg0: i32) -> (i32, i32) {
    %c0_i32 = arith.constant 0 : i32
    %c0_i32_0 = arith.constant 0 : i32
    %c0_i32_1 = arith.constant 0 : i32
    return %c0_i32, %c0_i32_0 : i32, i32
  }
  func.func @transform_3(%arg0: i32) -> (i32, i32) {
    %c0_i32 = arith.constant 0 : i32
    %c0_i32_0 = arith.constant 0 : i32
    %c0_i32_1 = arith.constant 0 : i32
    return %c0_i32, %c0_i32_0 : i32, i32
  }
  func.func @transform_4(%arg0: i32) -> (i32, i32) {
    %c0_i32 = arith.constant 0 : i32
    %c0_i32_0 = arith.constant 0 : i32
    %c0_i32_1 = arith.constant 0 : i32
    return %c0_i32, %c0_i32_0 : i32, i32
  }
  func.func @transform_5(%arg0: i32) -> (i32, i32) {
    %c0_i32 = arith.constant 0 : i32
    %c0_i32_0 = arith.constant 0 : i32
    %c0_i32_1 = arith.constant 0 : i32
    return %c0_i32, %c0_i32_0 : i32, i32
  }
  func.func @transform_6(%arg0: i32) -> (i32, i32) {
    %c0_i32 = arith.constant 0 : i32
    %c0_i32_0 = arith.constant 0 : i32
    %c0_i32_1 = arith.constant 0 : i32
    return %c0_i32, %c0_i32_0 : i32, i32
  }
  func.func @transform_7(%arg0: i32) -> (i32, i32) {
    %c0_i32 = arith.constant 0 : i32
    %c0_i32_0 = arith.constant 0 : i32
    %c0_i32_1 = arith.constant 0 : i32
    return %c0_i32, %c0_i32_0 : i32, i32
  }
  func.func @transform_8(%arg0: i32) -> (i32, i32) {
    %c0_i32 = arith.constant 0 : i32
    %c0_i32_0 = arith.constant 0 : i32
    %c0_i32_1 = arith.constant 0 : i32
    return %c0_i32, %c0_i32_0 : i32, i32
  }
  func.func @transform_9(%arg0: i32) -> (i32, i32) {
    %c0_i32 = arith.constant 0 : i32
    %c0_i32_0 = arith.constant 0 : i32
    %c0_i32_1 = arith.constant 0 : i32
    return %c0_i32, %c0_i32_0 : i32, i32
  }
  func.func @transform_10(%arg0: i32) -> (i32, i32) {
    %c0_i32 = arith.constant 0 : i32
    %c0_i32_0 = arith.constant 0 : i32
    %c0_i32_1 = arith.constant 0 : i32
    return %c0_i32, %c0_i32_0 : i32, i32
  }
  func.func @transform_11(%arg0: i32) -> (i32, i32) {
    %c0_i32 = arith.constant 0 : i32
    %c0_i32_0 = arith.constant 0 : i32
    %c0_i32_1 = arith.constant 0 : i32
    return %c0_i32, %c0_i32_0 : i32, i32
  }
  func.func @transform_12(%arg0: i32) -> (i32, i32) {
    %c0_i32 = arith.constant 0 : i32
    %c0_i32_0 = arith.constant 0 : i32
    %c0_i32_1 = arith.constant 0 : i32
    return %c0_i32, %c0_i32_0 : i32, i32
  }
  func.func @transform_13(%arg0: i32) -> (i32, i32) {
    %c0_i32 = arith.constant 0 : i32
    %c0_i32_0 = arith.constant 0 : i32
    %c0_i32_1 = arith.constant 0 : i32
    return %c0_i32, %c0_i32_0 : i32, i32
  }
  func.func @transform_14(%arg0: i32) -> (i32, i32) {
    %c0_i32 = arith.constant 0 : i32
    %c0_i32_0 = arith.constant 0 : i32
    %c0_i32_1 = arith.constant 0 : i32
    return %c0_i32, %c0_i32_0 : i32, i32
  }
  func.func @transform_15(%arg0: i32) -> (i32, i32) {
    %c0_i32 = arith.constant 0 : i32
    %c0_i32_0 = arith.constant 0 : i32
    %c0_i32_1 = arith.constant 0 : i32
    return %c0_i32, %c0_i32_0 : i32, i32
  }
  func.func @transform_16(%arg0: i32) -> (i32, i32) {
    %c0_i32 = arith.constant 0 : i32
    %c0_i32_0 = arith.constant 0 : i32
    %c0_i32_1 = arith.constant 0 : i32
    return %c0_i32, %c0_i32_0 : i32, i32
  }
  func.func @transform_17(%arg0: i32) -> (i32, i32) {
    %c0_i32 = arith.constant 0 : i32
    %c0_i32_0 = arith.constant 0 : i32
    return %arg0, %c0_i32 : i32, i32
  }
  func.func @transform_18(%arg0: i32) -> (i32, i32) {
    %c0_i32 = arith.constant 0 : i32
    %c0_i32_0 = arith.constant 0 : i32
    return %arg0, %c0_i32 : i32, i32
  }
  func.func @transform_19(%arg0: i32) -> (i32, i32) {
    %c0_i32 = arith.constant 0 : i32
    %c0_i32_0 = arith.constant 0 : i32
    return %arg0, %c0_i32 : i32, i32
  }
}

</mosaic_0001>

<bundles_post_ra>
// kernel: tpu_custom_call.1
= control target key start
LH: loop header
LB: loop body
LE: loop exit
PB: predicated region body
PF: predicated region fallthrough
CT: control target
= control target key end

     0   :  { %s2458_s0 = inlined_call_operand.vmem [shape: bf16[8,896], index: 0, kind: input, shape index: {}]   ;;  %s2459_s1 = inlined_call_operand.hbm [shape: bf16[896,128], index: 1, kind: input, shape index: {}]   ;;  %s2460_s2 = inlined_call_operand.vmem [shape: f32[1,128], index: 2, kind: input, shape index: {}]   ;;  %s2461_s3 = inlined_call_operand.vmem [shape: bf16[128,64], index: 3, kind: input, shape index: {}]   ;;  %s2462_s4 = inlined_call_operand.vmem [shape: f32[1,64], index: 4, kind: input, shape index: {}]   ;;  %s2463_s5 = inlined_call_operand.vmem [shape: f32[64,12], index: 5, kind: input, shape index: {}]   ;;  %s2464_s6 = inlined_call_operand.vmem [shape: f32[1,12], index: 6, kind: input, shape index: {}]   ;;  %s2465_s7 = inlined_call_operand.vmem [shape: f32[12,3], index: 7, kind: input, shape index: {}]   ;;  %s2466_s8 = inlined_call_operand.vmem [shape: f32[1,3], index: 8, kind: input, shape index: {}]   ;;  %s2467_s9 = inlined_call_operand.vmem [shape: f32[3,12], index: 9, kind: input, shape index: {}]   ;;  %s2468_s10 = inlined_call_operand.vmem [shape: f32[1,12], index: 10, kind: input, shape index: {}]   ;;  %s2469_s11 = inlined_call_operand.vmem [shape: f32[12,64], index: 11, kind: input, shape index: {}]   ;;  %s2470_s12 = inlined_call_operand.vmem [shape: f32[1,64], index: 12, kind: input, shape index: {}]   ;;  %s2471_s13 = inlined_call_operand.vmem [shape: bf16[64,128], index: 13, kind: input, shape index: {}]   ;;  %s2472_s14 = inlined_call_operand.vmem [shape: f32[1,128], index: 14, kind: input, shape index: {}]   ;;  %s2473_s15 = inlined_call_operand.hbm [shape: bf16[128,896], index: 15, kind: input, shape index: {}]   ;;  %s2474_s16 = inlined_call_operand.vmem [shape: f32[1,896], index: 16, kind: input, shape index: {}]   ;;  %s2475_s17 = inlined_call_operand.hbm [shape: f32[8,12], index: 17, kind: output, shape index: {0}]   ;;  %s2476_s18 = inlined_call_operand.vmem [shape: f32[8,3], index: 18, kind: output, shape index: {1}]   ;;  %s2477_s19 = inlined_call_operand.hbm [shape: f32[8,896], index: 19, kind: output, shape index: {2}]  }
   0x1   :  { %2480 = sst [smem:[#allocation14_spill]] %s2458_s0 }
   0x2   :  { %2481 = sst [smem:[#allocation15_spill]] %s2459_s1 }
   0x3   :  { %2482 = sst [smem:[#allocation16_spill]] %s2460_s2 }
   0x4   :  { %2483 = sst [smem:[#allocation17_spill]] %s2461_s3 }
   0x5   :  { %25 = vsyncpa [#allocation3], 0 }
   0x6   :  { %26 = vsyncpa [#allocation6], 0 }
   0x7   :  { %27 = vsyncpa [#allocation4], 0 }
   0x8   :  { %28 = vsyncpa [#allocation9], 0  ;;  %s2484_s20 = sld [smem:[#allocation15_spill]]  ;;  %s2217_s1 = smov [#allocation2]  }
   0x9   :  { %s37_s22 = sshll.u32 %s2217_s1, 4  ;;  %s74_s24 = sshll.u32 %s2473_s15, 4  ;;  %s38_s22 = int_to_ptr.vmem [resolvable:$true] %s37_s22  ;;  %s75_s24 = int_to_ptr.hbm [resolvable:$true] %s74_s24 }
   0xa   :  { %s2218_s25 = smov 64   ;;  %s2219_s3 = smov 4  }
   0xb   :  { %s2220_s26 = smov [#allocation5]   ;;  %s2221_s28 = smov 448  }
   0xc   :  { %s76_s27 = sshll.u32 %s2220_s26, 4  ;;  %s2222_s29 = smov 28   ;;  %s77_s27 = int_to_ptr.vmem [resolvable:$true] %s76_s27 }
   0xd   :  { %82 = dma.hbm_to_vmem [thread:$0]  %s75_s24, 7168, %s77_s27, [#allocation6], %s2221_s28, %s2221_s28, %s2222_s29  }
   0xe   :  { %s35_s21 = sshll.u32 %s2484_s20, 4  ;;  %s36_s21 = int_to_ptr.hbm [resolvable:$true] %s35_s21 }
   0xf   :  { %43 = dma.hbm_to_vmem [thread:$0]  %s36_s21, 7168, %s38_s22, [#allocation3], %s2218_s25, %s2218_s25, %s2219_s3  }
  0x10   :  { %2209 = dma.done.wait [#allocation3], 7168  }
  0x11   :  { %2210 = vsyncadd [#allocation3], 4294960128 }
  0x12   :  { %2211 = dma.done.wait [#allocation6], 7168  }
  0x13   :  { %2212 = vsyncadd [#allocation6], 4294960128  ;;  %v1967_v0 = vld [vmem:[#allocation2 + $0x38] sm:$0xff]  ;;  %v1966_v3 = vld [vmem:[#allocation2 + $0x30] sm:$0xff]  ;;  %s2485_s30 = sld [smem:[#allocation14_spill]]  ;;  %vm798_vm0 = vcmask 1043456  }
  0x14   :  { %v1975_v1 = vld [vmem:[#allocation2 + $0x78] sm:$0xff]  ;;  %575 = vmatpush.bf16.msra.mxu0 %v1967_v0  ;;  %v1974_v4 = vld [vmem:[#allocation2 + $0x70] sm:$0xff]  ;;  %v1965_v7 = vld [vmem:[#allocation2 + $0x28] sm:$0xff]  ;;  %s2486_s3 = sld [smem:[#allocation17_spill]]  ;;  %vm762_vm1 = vcmask 523264   ;;  %vm832_vm2 = vcmask 1042432  }
  0x15   :  { %v1983_v2 = vld [vmem:[#allocation2 + $0xb8] sm:$0xff]  ;;  %588 = vmatpush.bf16.msra.mxu1 %v1975_v1  ;;  %v1982_v5 = vld [vmem:[#allocation2 + $0xb0] sm:$0xff]  ;;  %v1973_v8 = vld [vmem:[#allocation2 + $0x68] sm:$0xff]  ;;  %s2487_s0 = sld [smem:[#allocation16_spill]]  ;;  %vm786_vm3 = vcmask 97280   ;;  %vm822_vm4 = vcmask 23552  }
  0x16   :  { %601 = vmatpush.bf16.msra.mxu2 %v1983_v2  ;;  %v1991_v6 = vld [vmem:[#allocation2 + $0xf8] sm:$0xff]  ;;  %v1981_v9 = vld [vmem:[#allocation2 + $0xa8] sm:$0xff]  ;;  %v1990_v10 = vld [vmem:[#allocation2 + $0xf0] sm:$0xff] }
  0x17   :  { %614 = vmatpush.bf16.msra.mxu3 %v1991_v6  ;;  %v1964_v11 = vld [vmem:[#allocation2 + $0x20] sm:$0xff]  ;;  %v1989_v14 = vld [vmem:[#allocation2 + $0xe8] sm:$0xff]  ;;  %v1963_v15 = vld [vmem:[#allocation2 + $0x18] sm:$0xff] }
  0x18   :  { %576 = vmatpush.bf16.msra.mxu0 %v1966_v3  ;;  %v1972_v12 = vld [vmem:[#allocation2 + $0x60] sm:$0xff]  ;;  %v1971_v16 = vld [vmem:[#allocation2 + $0x58] sm:$0xff]  ;;  %v1962_v19 = vld [vmem:[#allocation2 + $0x10] sm:$0xff] }
  0x19   :  { %589 = vmatpush.bf16.msra.mxu1 %v1974_v4  ;;  %v1980_v13 = vld [vmem:[#allocation2 + $0xa0] sm:$0xff]  ;;  %v1979_v17 = vld [vmem:[#allocation2 + $0x98] sm:$0xff]  ;;  %v1970_v20 = vld [vmem:[#allocation2 + $0x50] sm:$0xff] }
  0x1a   :  { %602 = vmatpush.bf16.msra.mxu2 %v1982_v5  ;;  %v1988_v18 = vld [vmem:[#allocation2 + $0xe0] sm:$0xff]  ;;  %v1978_v21 = vld [vmem:[#allocation2 + $0x90] sm:$0xff]  ;;  %v1987_v22 = vld [vmem:[#allocation2 + $0xd8] sm:$0xff] }
  0x1b   :  { %615 = vmatpush.bf16.msra.mxu3 %v1990_v10  ;;  %v1961_v23 = vld [vmem:[#allocation2 + $0x8] sm:$0xff]  ;;  %v94_v25 = vld [vmem:[%s2485_s30] sm:$0xff]  ;;  %v1986_v27 = vld [vmem:[#allocation2 + $0xd0] sm:$0xff] }
  0x1c   :  { %577 = vmatpush.bf16.msra.mxu0 %v1965_v7  ;;  %v1969_v24 = vld [vmem:[#allocation2 + $0x48] sm:$0xff]  ;;  %v218_v29 = vunpack.c.l.b16 %v94_v25  ;;  %v1960_v30 = vld [vmem:[#allocation2] sm:$0xff]  ;;  %v219_v33 = vunpack.c.h.b16 %v94_v25  ;;  %v1999_v35 = vld [vmem:[#allocation2 + $0x138] sm:$0xff] }
  0x1d   :  { %590 = vmatpush.bf16.msra.mxu1 %v1973_v8  ;;  %v1977_v26 = vld [vmem:[#allocation2 + $0x88] sm:$0xff]  ;;  %v1968_v31 = vld [vmem:[#allocation2 + $0x40] sm:$0xff]  ;;  %v2007_v36 = vld [vmem:[#allocation2 + $0x178] sm:$0xff] }
  0x1e   :  { %603 = vmatpush.bf16.msra.mxu2 %v1981_v9  ;;  %v95_v28 = vld [vmem:[%s2485_s30 + $0x8] sm:$0xff]  ;;  %v1976_v34 = vld [vmem:[#allocation2 + $0x80] sm:$0xff]  ;;  %v2015_v37 = vld [vmem:[#allocation2 + $0x1b8] sm:$0xff]  ;;  %v225_v38 = vpack.c.b16 %v218_v29, %v218_v29  ;;  %v226_v41 = vpack.c.b16 %v219_v33, %v219_v33 }
  0x1f   :  { %616 = vmatpush.bf16.msra.mxu3 %v1989_v14  ;;  %v220_v32 = vunpack.c.l.b16 %v95_v28  ;;  %v1985_v39 = vld [vmem:[#allocation2 + $0xc8] sm:$0xff]  ;;  %v1998_v42 = vld [vmem:[#allocation2 + $0x130] sm:$0xff]  ;;  %v1984_v45 = vld [vmem:[#allocation2 + $0xc0] sm:$0xff]  ;;  %v221_v46 = vunpack.c.h.b16 %v95_v28 }
  0x20   :  { %578 = vmatpush.bf16.msra.mxu0 %v1964_v11  ;;  %v2006_v43 = vld [vmem:[#allocation2 + $0x170] sm:$0xff]  ;;  %v1997_v47 = vld [vmem:[#allocation2 + $0x128] sm:$0xff]  ;;  %v1996_v51 = vld [vmem:[#allocation2 + $0x120] sm:$0xff] }
  0x21   :  { %591 = vmatpush.bf16.msra.mxu1 %v1972_v12  ;;  %v227_v40 = vpack.c.b16 %v220_v32, %v220_v32  ;;  %v2014_v44 = vld [vmem:[#allocation2 + $0x1b0] sm:$0xff]  ;;  %v2005_v48 = vld [vmem:[#allocation2 + $0x168] sm:$0xff]  ;;  %v228_v50 = vpack.c.b16 %v221_v46, %v221_v46  ;;  %v2004_v52 = vld [vmem:[#allocation2 + $0x160] sm:$0xff] }
  0x22   :  { %604 = vmatpush.bf16.msra.mxu2 %v1980_v13  ;;  %v2013_v49 = vld [vmem:[#allocation2 + $0x1a8] sm:$0xff]  ;;  %v2012_v53 = vld [vmem:[#allocation2 + $0x1a0] sm:$0xff]  ;;  %v1995_v54 = vld [vmem:[#allocation2 + $0x118] sm:$0xff] }
  0x23   :  { %617 = vmatpush.bf16.msra.mxu3 %v1988_v18  ;;  %v2003_v55 = vld [vmem:[#allocation2 + $0x158] sm:$0xff]  ;;  %v1994_v57 = vld [vmem:[#allocation2 + $0x110] sm:$0xff]  ;;  %v1993_v60 = vld [vmem:[#allocation2 + $0x108] sm:$0xff] }
  0x24   :  { %579 = vmatpush.bf16.msra.mxu0 %v1963_v15  ;;  %v2011_v56 = vld [vmem:[#allocation2 + $0x198] sm:$0xff]  ;;  %v2002_v58 = vld [vmem:[#allocation2 + $0x150] sm:$0xff]  ;;  %v2001_v62 = vld [vmem:[#allocation2 + $0x148] sm:$0xff] }
  0x25   :  { %592 = vmatpush.bf16.msra.mxu1 %v1971_v16  ;;  %v2010_v59 = vld [vmem:[#allocation2 + $0x190] sm:$0xff]  ;;  %v2009_v63 = vld [vmem:[#allocation2 + $0x188] sm:$0xff]  ;;  %v97_v0 = vld [vmem:[%s2485_s30 + $0x18] sm:$0xf] }
  0x26   :  { %605 = vmatpush.bf16.msra.mxu2 %v1979_v17  ;;  %v96_v61 = vld [vmem:[%s2485_s30 + $0x10] sm:$0xff]  ;;  %v1992_v2 = vld [vmem:[#allocation2 + $0x100] sm:$0xff]  ;;  %v224_v4 = vunpack.c.l.b16 %v97_v0  ;;  %v2023_v10 = vld [vmem:[%s2486_s3 + $0x38] sm:$0xff]  ;;  %s2223_s30 = smov [#allocation7]  }
  0x27   :  { %618 = vmatpush.bf16.msra.mxu3 %v1987_v22  ;;  %v222_v1 = vunpack.c.l.b16 %v96_v61  ;;  %v223_v3 = vunpack.c.h.b16 %v96_v61  ;;  %v2000_v5 = vld [vmem:[#allocation2 + $0x140] sm:$0xff]  ;;  %v2022_v11 = vld [vmem:[%s2486_s3 + $0x30] sm:$0xff]  ;;  %v2021_v12 = vld [vmem:[%s2486_s3 + $0x28] sm:$0xff] }
  0x28   :  { %580 = vmatpush.bf16.msra.mxu0 %v1962_v19  ;;  %v2008_v6 = vld [vmem:[#allocation2 + $0x180] sm:$0xff]  ;;  %v231_v9 = vpack.c.b16 %v224_v4, %v224_v4  ;;  %v2019_v14 = vld [vmem:[%s2486_s3 + $0x18] sm:$0xff]  ;;  %v2018_v15 = vld [vmem:[%s2486_s3 + $0x10] sm:$0xff] }
  0x29   :  { %593 = vmatpush.bf16.msra.mxu1 %v1970_v20  ;;  %v229_v7 = vpack.c.b16 %v222_v1, %v222_v1  ;;  %v230_v8 = vpack.c.b16 %v223_v3, %v223_v3  ;;  %v2020_v13 = vld [vmem:[%s2486_s3 + $0x20] sm:$0xff]  ;;  %v2017_v18 = vld [vmem:[%s2486_s3 + $0x8] sm:$0xff]  ;;  %v752_v32 = vld [vmem:[%s2463_s5 + $0x10] sm:$0xff] }
  0x2a   :  { %606 = vmatpush.bf16.msra.mxu2 %v1978_v21  ;;  %v2016_v19 = vld [vmem:[%s2486_s3] sm:$0xff]  ;;  %v2027_v3 = vld [vmem:[%s2471_s13 + $0x18] sm:$0xff]  ;;  %v2026_v4 = vld [vmem:[%s2471_s13 + $0x10] sm:$0xff]  ;;  %s1423_s3 = sshll.u32 %s2223_s30, 4  ;;  %s1424_s3 = int_to_ptr.vmem [resolvable:$true] %s1423_s3 }
  0x2b   :  { %619 = vmatpush.bf16.msra.mxu3 %v1986_v27  ;;  %v2092_v25 = vld [vmem:[%s2487_s0] ss:$0 sm:$0xff]  ;;  %v755_v27 = vld [vmem:[%s2463_s5 + $0x28] sm:$0xff] }
  0x2c   :  { %581 = vmatpush.bf16.msra.mxu0 %v1961_v23  ;;  %v757_v23 = vld [vmem:[%s2463_s5 + $0x38] sm:$0xff]  ;;  %v754_v29 = vld [vmem:[%s2463_s5 + $0x20] sm:$0xff] }
  0x2d   :  { %594 = vmatpush.bf16.msra.mxu1 %v1969_v24  ;;  %v756_v24 = vld [vmem:[%s2463_s5 + $0x30] sm:$0xff]  ;;  %v2095_v0 = vld [vmem:[%s2466_s8] ss:$0 sm:$0xff] }
  0x2e   :  { %607 = vmatpush.bf16.msra.mxu2 %v1977_v26 }
  0x2f   :  { %620 = vmatpush.bf16.msra.mxu3 %v1985_v39 }
  0x30   :  { %582 = vmatpush.bf16.msra.mxu0 %v1960_v30 }
  0x31   :  { %595 = vmatpush.bf16.msra.mxu1 %v1968_v31  ;;  %v753_v31 = vld [vmem:[%s2463_s5 + $0x18] sm:$0xff] }
  0x32   :  { %608 = vmatpush.bf16.msra.mxu2 %v1976_v34 }
  0x33   :  { %583 = vmatmul.bf16.vlgmr.msra.gmra.mxu0 %v225_v38  ;;  %621 = vmatpush.bf16.msra.mxu3 %v1984_v45 }
  0x34   :  { %627 = vmatpush.bf16.msrb.mxu0 %v1999_v35  ;;  %596 = vmatmul.bf16.vlgmr.msra.gmra.mxu1 %v226_v41 }
  0x35   :  { %640 = vmatpush.bf16.msrb.mxu1 %v2007_v36  ;;  %609 = vmatmul.bf16.vlgmr.msra.gmra.mxu2 %v227_v40 }
  0x36   :  { %653 = vmatpush.bf16.msrb.mxu2 %v2015_v37  ;;  %622 = vmatmul.bf16.vlgmr.msra.gmra.mxu3 %v228_v50  ;;  %v790_v50 = vld [vmem:[%s2465_s7 + $0x8] sm:$0xf] }
  0x37   :  { %736 = vmatpush.bf16.msrb.mxu3 %v2023_v10  ;;  %v2024_v10 = vld [vmem:[%s2471_s13] sm:$0xff] }
  0x38   :  { %628 = vmatpush.bf16.msrb.mxu0 %v1998_v42 }
  0x39   :  { %641 = vmatpush.bf16.msrb.mxu1 %v2006_v43 }
  0x3a   :  { %654 = vmatpush.bf16.msrb.mxu2 %v2014_v44 }
  0x3b   :  { %737 = vmatpush.bf16.msrb.mxu3 %v2022_v11  ;;  %v1934_v11 = vld [vmem:[#allocation5 + $0x188] sm:$0xf] }
  0x3c   :  { %629 = vmatpush.bf16.msrb.mxu0 %v1997_v47 }
  0x3d   :  { %642 = vmatpush.bf16.msrb.mxu1 %v2005_v48  ;;  %v751_v48 = vld [vmem:[%s2463_s5 + $0x8] sm:$0xff] }
  0x3e   :  { %655 = vmatpush.bf16.msrb.mxu2 %v2013_v49  ;;  %v750_v49 = vld [vmem:[%s2463_s5] sm:$0xff] }
  0x3f   :  { %738 = vmatpush.bf16.msrb.mxu3 %v2021_v12  ;;  %v2080_v12 = vld [vmem:[#allocation5 + $0x1a0] sm:$0xf0] }
  0x40   :  { %630 = vmatpush.bf16.msrb.mxu0 %v1996_v51  ;;  %v2093_v51 = vld [vmem:[%s2462_s4] ss:$0 sm:$0xff]  ;;  %s1425_s4 = sshll.u32 %s2475_s17, 4  ;;  %s1426_s4 = int_to_ptr.hbm [resolvable:$true] %s1425_s4 }
  0x41   :  { %643 = vmatpush.bf16.msrb.mxu1 %v2004_v52 }
  0x42   :  { %656 = vmatpush.bf16.msrb.mxu2 %v2012_v53 }
  0x43   :  { %739 = vmatpush.bf16.msrb.mxu3 %v2020_v13  ;;  %v2077_v13 = vld [vmem:[#allocation5 + $0x18c] sm:$0xf] }
  0x44   :  { %631 = vmatpush.bf16.msrb.mxu0 %v1995_v54 }
  0x45   :  { %644 = vmatpush.bf16.msrb.mxu1 %v2003_v55 }
  0x46   :  { %657 = vmatpush.bf16.msrb.mxu2 %v2011_v56  ;;  %v789_v56 = vld [vmem:[%s2465_s7] sm:$0xff] }
  0x47   :  { %740 = vmatpush.bf16.msrb.mxu3 %v2019_v14  ;;  %v1935_v14 = vor.u32 %v2080_v12, %v1934_v11  ;;  %v2038_v11 = vld [vmem:[#allocation5 + $0x50] sm:$0xf0] }
  0x48   :  { %632 = vmatpush.bf16.msrb.mxu0 %v1994_v57  ;;  %v824_v57 = vld [vmem:[%s2467_s9] sm:$0x7]  ;;  %s1438_s9 = sshll.u32 %s2477_s19, 4  ;;  %s1439_s9 = int_to_ptr.hbm [resolvable:$true] %s1438_s9 }
  0x49   :  { %645 = vmatpush.bf16.msrb.mxu1 %v2002_v58  ;;  %v2094_v58 = vld [vmem:[%s2464_s6] ss:$0 sm:$0xff] }
  0x4a   :  { %658 = vmatpush.bf16.msrb.mxu2 %v2010_v59 }
  0x4b   :  { %741 = vmatpush.bf16.msrb.mxu3 %v2018_v15  ;;  %v1936_v15 = vld [vmem:[#allocation5 + $0x1a4] sm:$0xf0] }
  0x4c   :  { %633 = vmatpush.bf16.msrb.mxu0 %v1993_v60 }
  0x4d   :  { %646 = vmatpush.bf16.msrb.mxu1 %v2001_v62  ;;  %v858_v62 = vld [vmem:[%s2469_s11 + $0x8] sm:$0xf] }
  0x4e   :  { %659 = vmatpush.bf16.msrb.mxu2 %v2009_v63  ;;  %v857_v63 = vld [vmem:[%s2469_s11] sm:$0xff] }
  0x4f   :  { %742 = vmatpush.bf16.msrb.mxu3 %v2017_v18  ;;  %v1939_v18 = vor.u32 %v2077_v13, %v1936_v15  ;;  %v2035_v15 = vld [vmem:[#allocation5 + $0x3c] sm:$0xf] }
  0x50   :  { %634 = vmatpush.bf16.msrb.mxu0 %v1992_v2 }
  0x51   :  { %647 = vmatpush.bf16.msrb.mxu1 %v2000_v5  ;;  %v2096_v5 = vld [vmem:[%s2468_s10] ss:$0 sm:$0xff] }
  0x52   :  { %660 = vmatpush.bf16.msrb.mxu2 %v2008_v6 }
  0x53   :  { %635 = vmatmul.bf16.vlgmr.msrb.gmra.mxu0 %v229_v7  ;;  %743 = vmatpush.bf16.msrb.mxu3 %v2016_v19 }
  0x54   :  { %648 = vmatmul.bf16.vlgmr.msrb.gmra.mxu1 %v230_v8  ;;  %774 = vmatpush.msra.mxu0 %v757_v23 }
  0x55   :  { %661 = vmatmul.bf16.vlgmr.msrb.gmra.mxu2 %v231_v9  ;;  %v2025_v9 = vld [vmem:[%s2471_s13 + $0x8] sm:$0xff]  ;;  %1313 = vmatpush.bf16.msra.mxu1 %v1935_v14 }
  0x56   :  { %775 = vmatpush.msra.mxu0 %v756_v24  ;;  %1715 = vmatpush.msk.msra.mxu2 %vm832_vm2, %v824_v57  ;;  %v1908_v24 = vld [vmem:[#allocation5 + $0x16c] sm:$0xf0] }
  0x57   :  { %1717 = vmatpush.msk.msra.mxu3 %vm798_vm0, %v858_v62  ;;  %v1794_v62 = vld [vmem:[#allocation5 + $0x70] sm:$0xf] }
  0x58   :  { %776 = vmatpush.msra.mxu0 %v755_v27  ;;  %1326 = vmatpush.bf16.msrb.mxu2 %v1939_v18  ;;  %v1768_v18 = vld [vmem:[#allocation5 + $0x54] sm:$0xf0] }
  0x59   :  { %884 = vmatpush.msra.mxu3 %v857_v63  ;;  %v2045_v63 = vld [vmem:[#allocation5 + $0x88] sm:$0xf0] }
  0x5a   :  { %777 = vmatpush.msra.mxu0 %v754_v29  ;;  %v1878_v29 = vld [vmem:[#allocation5 + $0x118] sm:$0xf] }
  0x5c   :  { %778 = vmatpush.msra.mxu0 %v753_v31  ;;  %v2063_v31 = vld [vmem:[#allocation5 + $0x11c] sm:$0xf] }
  0x5e   :  { %779 = vmatpush.msra.mxu0 %v752_v32  ;;  %v1880_v32 = vld [vmem:[#allocation5 + $0x134] sm:$0xf0] }
  0x60   :  { %780 = vmatpush.msra.mxu0 %v751_v48 }
  0x62   :  { %781 = vmatpush.msra.mxu0 %v750_v49  ;;  %v1822_v49 = vld [vmem:[#allocation5 + $0xa8] sm:$0xf] }
  0x64   :  { %1713 = vmatpush.msk.msrb.mxu0 %vm798_vm0, %v790_v50  ;;  %v2052_v50 = vld [vmem:[#allocation5 + $0xc0] sm:$0xf0] }
  0x66   :  { %817 = vmatpush.msrb.mxu0 %v789_v56  ;;  %v1830_v56 = vld [vmem:[#allocation5 + $0xb0] sm:$0xf] }
  0xb0   :  { %v584_v16 = vpop.f32.mrf.mxu0 }
  0xb1   :  { %v597_v17 = vpop.f32.mrf.mxu1  ;;  %v585_v30 = vadd.f32 %v2092_v25, %v584_v16  ;;  %v1942_v16 = vld [vmem:[#allocation5 + $0x190] sm:$0xf]  ;;  %v1914_v25 = vld [vmem:[#allocation5 + $0x158] sm:$0xf] }
  0xb3   :  { %v598_v33 = vadd.f32 %v597_v17, %v585_v30  ;;  %v2081_v17 = vld [vmem:[#allocation5 + $0x1a8] sm:$0xf0]  ;;  %v2066_v30 = vld [vmem:[#allocation5 + $0x130] sm:$0xf0] }
  0xb4   :  { %v1943_v19 = vor.u32 %v2081_v17, %v1942_v16  ;;  %v2050_v16 = vld [vmem:[#allocation5 + $0xb4] sm:$0xf]  ;;  %v1832_v17 = vld [vmem:[#allocation5 + $0xcc] sm:$0xf0] }
  0xb8   :  { %v610_v20 = vpop.f32.mrf.mxu2  ;;  %v586_v21 = vpop.f32.mrf.mxu0 }
  0xb9   :  { %v599_v22 = vpop.f32.mrf.mxu1  ;;  %v623_v26 = vpop.f32.mrf.mxu3  ;;  %v611_v35 = vadd.f32 %v610_v20, %v598_v33  ;;  %v1906_v20 = vld [vmem:[#allocation5 + $0x150] sm:$0xf]  ;;  %v2073_v21 = vld [vmem:[#allocation5 + $0x168] sm:$0xf0]  ;;  %v1886_v33 = vld [vmem:[#allocation5 + $0x120] sm:$0xf] }
  0xba   :  { %v2070_v22 = vld [vmem:[#allocation5 + $0x154] sm:$0xf]  ;;  %v1907_v23 = vor.u32 %v2073_v21, %v1906_v20  ;;  %v2039_v20 = vld [vmem:[#allocation5 + $0x58] sm:$0xf0]  ;;  %v2097_v21 = vld [vmem:[%s2470_s12] ss:$0 sm:$0xff] }
  0xbb   :  { %v624_v36 = vadd.f32 %v623_v26, %v611_v35  ;;  %v2074_v26 = vld [vmem:[#allocation5 + $0x170] sm:$0xf0]  ;;  %v1911_v27 = vor.u32 %v2070_v22, %v1908_v24  ;;  %v1879_v35 = vor.u32 %v2066_v30, %v1878_v29  ;;  %v2031_v24 = vld [vmem:[#allocation5 + $0x18] sm:$0xf0]  ;;  %v1804_v30 = vld [vmem:[#allocation5 + $0x94] sm:$0xf0] }
  0xbc   :  { %1314 = vmatpush.bf16.msra.mxu1 %v1907_v23  ;;  %v1738_v23 = vld [vmem:[#allocation5] sm:$0xf]  ;;  %v2043_v29 = vld [vmem:[#allocation5 + $0x7c] sm:$0xf] }
  0xbd   :  { %1327 = vmatpush.bf16.msrb.mxu2 %v1911_v27 }
  0xc0   :  { %v612_v28 = vpop.f32.mrf.mxu2  ;;  %1315 = vmatpush.bf16.msra.mxu1 %v1879_v35 }
  0xc1   :  { %v625_v34 = vpop.f32.mrf.mxu3  ;;  %v1915_v28 = vor.u32 %v2074_v26, %v1914_v25  ;;  %v1835_v25 = vor.u32 %v2050_v16, %v1832_v17  ;;  %v1771_v26 = vor.u32 %v2035_v15, %v1768_v18  ;;  %v1874_v17 = vld [vmem:[#allocation5 + $0xf8] sm:$0xf]  ;;  %v2062_v18 = vld [vmem:[#allocation5 + $0x110] sm:$0xf0] }
  0xc2   :  { %v2067_v34 = vld [vmem:[#allocation5 + $0x138] sm:$0xf0] }
  0xd0   :  { %v636_v37 = vpop.f32.mrf.mxu0 }
  0xd1   :  { %v649_v38 = vpop.f32.mrf.mxu1  ;;  %v637_v39 = vadd.f32 %v636_v37, %v624_v36  ;;  %v1850_v36 = vld [vmem:[#allocation5 + $0xe0] sm:$0xf]  ;;  %v2059_v37 = vld [vmem:[#allocation5 + $0xf8] sm:$0xf0] }
  0xd2   :  { %v1851_v48 = vor.u32 %v2059_v37, %v1850_v36  ;;  %v1950_v36 = vld [vmem:[#allocation5 + $0x198] sm:$0xf]  ;;  %v2082_v37 = vld [vmem:[#allocation5 + $0x1b0] sm:$0xf0] }
  0xd3   :  { %v650_v40 = vadd.f32 %v649_v38, %v637_v39  ;;  %v1883_v38 = vor.u32 %v2063_v31, %v1880_v32  ;;  %v1887_v39 = vor.u32 %v2067_v34, %v1886_v33  ;;  %v1740_v32 = vld [vmem:[#allocation5 + $0x1c] sm:$0xf0]  ;;  %v1746_v33 = vld [vmem:[#allocation5 + $0x8] sm:$0xf]  ;;  %v2032_v34 = vld [vmem:[#allocation5 + $0x20] sm:$0xf0] }
  0xd4   :  { %1316 = vmatpush.bf16.msra.mxu1 %v1851_v48 }
  0xd5   :  { %1328 = vmatpush.bf16.msrb.mxu2 %v1883_v38  ;;  %v2079_v38 = vld [vmem:[#allocation5 + $0x19c] sm:$0xf] }
  0xd8   :  { %v662_v41 = vpop.f32.mrf.mxu2  ;;  %v638_v43 = vpop.f32.mrf.mxu0 }
  0xd9   :  { %v663_v42 = vadd.f32 %v662_v41, %v650_v40  ;;  %v651_v44 = vpop.f32.mrf.mxu1  ;;  %v2056_v40 = vld [vmem:[#allocation5 + $0xe4] sm:$0xf]  ;;  %v2078_v41 = vld [vmem:[#allocation5 + $0x194] sm:$0xf]  ;;  %v1852_v43 = vld [vmem:[#allocation5 + $0xfc] sm:$0xf0] }
  0xda   :  { %v1858_v44 = vld [vmem:[#allocation5 + $0xe8] sm:$0xf] }
  0xdb   :  { %v666_v45 = vmax.f32 %v663_v42, 0.0  ;;  %v1944_v42 = vld [vmem:[#allocation5 + $0x1ac] sm:$0xf0] }
  0xdd   :  { %v667_v46 = vpack.c.bf16 %v666_v45, %v666_v45  ;;  %v2060_v45 = vld [vmem:[#allocation5 + $0x100] sm:$0xf0] }
  0xdf   :  { %744 = vmatmul.bf16.vlgmr.msrb.gmra.mxu3 %v667_v46  ;;  %v1947_v46 = vor.u32 %v2078_v41, %v1944_v42  ;;  %v1958_v41 = vld [vmem:[#allocation5 + $0x1a0] sm:$0xf]  ;;  %v2083_v42 = vld [vmem:[#allocation5 + $0x1b8] sm:$0xf0] }
  0xe0   :  { %v664_v47 = vpop.f32.mrf.mxu2  ;;  %1339 = vmatpush.bf16.msrb.mxu3 %v1943_v19  ;;  %v1774_v19 = vld [vmem:[#allocation5 + $0x40] sm:$0xf] }
  0xe1   :  { %v2071_v47 = vld [vmem:[#allocation5 + $0x15c] sm:$0xf]  ;;  %v1775_v27 = vor.u32 %v2039_v20, %v1774_v19  ;;  %v1875_v19 = vor.u32 %v2062_v18, %v1874_v17  ;;  %v1838_v20 = vld [vmem:[#allocation5 + $0xb8] sm:$0xf] }
  0xe4   :  { %1340 = vmatpush.bf16.msrb.mxu3 %v1915_v28  ;;  %v2028_v28 = vld [vmem:[#allocation5 + $0x4] sm:$0xf] }
  0xe8   :  { %1341 = vmatpush.bf16.msrb.mxu3 %v1887_v39  ;;  %v1739_v39 = vor.u32 %v2031_v24, %v1738_v23  ;;  %v1840_v24 = vld [vmem:[#allocation5 + $0xd4] sm:$0xf0] }
 0x162   :  { %v745_v52 = vpop.f32.mrf.mxu3 }
 0x163   :  { %v746_v53 = vadd.f32 %v2093_v51, %v745_v52  ;;  %v1916_v51 = vld [vmem:[#allocation5 + $0x174] sm:$0xf0]  ;;  %v1855_v52 = vor.u32 %v2056_v40, %v1852_v43  ;;  %v1807_v43 = vor.u32 %v2043_v29, %v1804_v30  ;;  %v1810_v29 = vld [vmem:[#allocation5 + $0x80] sm:$0xf]  ;;  %v2047_v30 = vld [vmem:[#allocation5 + $0x98] sm:$0xf0] }
 0x164   :  { %v1919_v57 = vor.u32 %v2071_v47, %v1916_v51  ;;  %v1952_v40 = vld [vmem:[#allocation5 + $0x1b4] sm:$0xf0]  ;;  %v1951_v47 = vor.u32 %v2082_v37, %v1950_v36  ;;  %v1922_v51 = vld [vmem:[#allocation5 + $0x160] sm:$0xf] }
 0x165   :  { %v749_v54 = vmax.f32 %v746_v53, 0.0  ;;  %v1859_v53 = vor.u32 %v2060_v45, %v1858_v44  ;;  %1329 = vmatpush.bf16.msrb.mxu2 %v1855_v52  ;;  %v1743_v45 = vor.u32 %v2028_v28, %v1740_v32  ;;  %v2075_v52 = vld [vmem:[#allocation5 + $0x178] sm:$0xf0]  ;;  %v1811_v32 = vor.u32 %v2047_v30, %v1810_v29 }
 0x167   :  { %1712 = vmatmul.msk.f32.vlgmr.msra.gmra.mxu0 %vm762_vm1, %v749_v54  ;;  %v2049_v54 = vld [vmem:[#allocation5 + $0xac] sm:$0xf]  ;;  %1342 = vmatpush.bf16.msrb.mxu3 %v1859_v53  ;;  %v2072_v53 = vld [vmem:[#allocation5 + $0x164] sm:$0xf] }
 0x168   :  { %934 = vmatpush.bf16.msra.mxu0 %v2027_v3  ;;  %v2042_v3 = vld [vmem:[#allocation5 + $0x74] sm:$0xf] }
 0x16a   :  { %v747_v55 = vpop.f32.mrf.mxu3 }
 0x16b   :  { %v1824_v55 = vld [vmem:[#allocation5 + $0xc4] sm:$0xf0] }
 0x16c   :  { %935 = vmatpush.bf16.msra.mxu0 %v2026_v4  ;;  %v2057_v4 = vld [vmem:[#allocation5 + $0xec] sm:$0xf] }
 0x170   :  { %936 = vmatpush.bf16.msra.mxu0 %v2025_v9  ;;  %v1795_v9 = vor.u32 %v2045_v63, %v1794_v62  ;;  %v1894_v62 = vld [vmem:[#allocation5 + $0x128] sm:$0xf] }
 0x174   :  { %937 = vmatpush.bf16.msra.mxu0 %v2024_v10  ;;  %v1766_v10 = vld [vmem:[#allocation5 + $0x38] sm:$0xf] }
 0x175   :  { %v1767_v22 = vor.u32 %v2038_v11, %v1766_v10  ;;  %v1866_v10 = vld [vmem:[#allocation5 + $0xf0] sm:$0xf] }
 0x1e4   :  { %v783_v59 = vpop.f32.mrf.mxu0 }
 0x1e5   :  { %v784_v60 = vadd.f32 %v2094_v58, %v783_v59  ;;  %v2053_v58 = vld [vmem:[#allocation5 + $0xc8] sm:$0xf0]  ;;  %v2064_v59 = vld [vmem:[#allocation5 + $0x124] sm:$0xf] }
 0x1e7   :  { %v788_v61 = vmax.f32 %v784_v60, 0.0  ;;  %787 = vst.msk [vmem:[#allocation7] sm:$0xff] %vm786_vm3, %v784_v60  ;;  %v1888_v60 = vld [vmem:[#allocation5 + $0x13c] sm:$0xf0] }
 0x1e8   :  { %1428 = dma.vmem_to_hbm [thread:$0]  %s1424_s3, 128, %s1426_s4, [#allocation4]  }
 0x1e9   :  { %1714 = vmatmul.msk.f32.vlgmr.msrb.gmra.mxu0 %vm786_vm3, %v788_v61  ;;  %v1823_v61 = vor.u32 %v2052_v50, %v1822_v49  ;;  %v1955_v49 = vor.u32 %v2079_v38, %v1952_v40  ;;  %v1959_v50 = vor.u32 %v2083_v42, %v1958_v41  ;;  %v1782_v38 = vld [vmem:[#allocation5 + $0x48] sm:$0xf]  ;;  %v2037_v40 = vld [vmem:[#allocation5 + $0x4c] sm:$0xf]  ;;  %v1790_v42 = vld [vmem:[#allocation5 + $0x50] sm:$0xf] }
 0x1ea   :  { %1352 = vmatpush.bf16.msrb.mxu0 %v1947_v46  ;;  %v1747_v46 = vor.u32 %v2032_v34, %v1746_v33  ;;  %v1812_v33 = vld [vmem:[#allocation5 + $0x9c] sm:$0xf0]  ;;  %v1818_v34 = vld [vmem:[#allocation5 + $0x88] sm:$0xf] }
 0x1eb   :  { %1317 = vmatpush.bf16.msra.mxu1 %v1823_v61  ;;  %v1776_v61 = vld [vmem:[#allocation5 + $0x5c] sm:$0xf0]  ;;  %v1784_v41 = vld [vmem:[#allocation5 + $0x64] sm:$0xf0] }
 0x1ee   :  { %1353 = vmatpush.bf16.msrb.mxu0 %v1919_v57  ;;  %v1923_v57 = vor.u32 %v2075_v52, %v1922_v51  ;;  %v1762_v51 = vld [vmem:[#allocation5 + $0x18] sm:$0xf]  ;;  %v2034_v52 = vld [vmem:[#allocation5 + $0x30] sm:$0xf0] }
 0x1ef   :  { %1318 = vmatpush.bf16.msra.mxu1 %v1795_v9  ;;  %v1748_v9 = vld [vmem:[#allocation5 + $0x24] sm:$0xf0] }
 0x1f3   :  { %1319 = vmatpush.bf16.msra.mxu1 %v1767_v22  ;;  %v2051_v22 = vld [vmem:[#allocation5 + $0xbc] sm:$0xf] }
 0x1f7   :  { %1320 = vmatpush.bf16.msra.mxu1 %v1739_v39  ;;  %v2040_v39 = vld [vmem:[#allocation5 + $0x60] sm:$0xf0] }
 0x1fb   :  { %1365 = vmatpush.bf16.msrb.mxu1 %v1951_v47  ;;  %v1754_v47 = vld [vmem:[#allocation5 + $0x10] sm:$0xf] }
 0x1ff   :  { %1366 = vmatpush.bf16.msrb.mxu1 %v1923_v57 }
 0x266   :  { %v819_v1 = vpop.f32.mrf.mxu0 }
 0x267   :  { %v820_v2 = vadd.f32 %v2095_v0, %v819_v1  ;;  %v1891_v0 = vor.u32 %v2064_v59, %v1888_v60  ;;  %v1827_v1 = vor.u32 %v2049_v54, %v1824_v55  ;;  %v1924_v54 = vld [vmem:[#allocation5 + $0x17c] sm:$0xf0]  ;;  %v1930_v55 = vld [vmem:[#allocation5 + $0x168] sm:$0xf]  ;;  %v2036_v60 = vld [vmem:[#allocation5 + $0x44] sm:$0xf] }
 0x268   :  { %v1779_v63 = vor.u32 %v2036_v60, %v1776_v61 }
 0x269   :  { %823 = vst.msk [vmem:[%s2476_s18] sm:$0xff] %vm822_vm4, %v820_v2  ;;  %1716 = vmatmul.msk.f32.vlgmr.msra.gmra.mxu2 %vm822_vm4, %v820_v2  ;;  %v1831_v2 = vor.u32 %v2053_v58, %v1830_v56  ;;  %1354 = vmatpush.bf16.msrb.mxu0 %v1891_v0  ;;  %v2076_v56 = vld [vmem:[#allocation5 + $0x180] sm:$0xf0]  ;;  %v1927_v58 = vor.u32 %v2072_v53, %v1924_v54 }
 0x26a   :  { %1330 = vmatpush.bf16.msrb.mxu2 %v1827_v1  ;;  %v1931_v59 = vor.u32 %v2076_v56, %v1930_v55  ;;  %v2068_v0 = vld [vmem:[#allocation5 + $0x140] sm:$0xf0]  ;;  %v2065_v1 = vld [vmem:[#allocation5 + $0x12c] sm:$0xf]  ;;  %v1763_v55 = vor.u32 %v2034_v52, %v1762_v51  ;;  %v2098_v56 = vld [vmem:[%s2472_s14] ss:$0 sm:$0xff] }
 0x26b   :  { %1343 = vmatpush.bf16.msrb.mxu3 %v1831_v2  ;;  %v1896_v2 = vld [vmem:[#allocation5 + $0x144] sm:$0xf0] }
 0x2ec   :  { %v853_v6 = vpop.f32.mrf.mxu2 }
 0x2ed   :  { %v854_v7 = vadd.f32 %v2096_v5, %v853_v6  ;;  %v1860_v5 = vld [vmem:[#allocation5 + $0x104] sm:$0xf0]  ;;  %v1796_v6 = vld [vmem:[#allocation5 + $0x8c] sm:$0xf0] }
 0x2ee   :  { %v1863_v12 = vor.u32 %v2057_v4, %v1860_v5  ;;  %v1799_v13 = vor.u32 %v2042_v3, %v1796_v6  ;;  %v1895_v3 = vor.u32 %v2068_v0, %v1894_v62  ;;  %v1899_v4 = vor.u32 %v2065_v1, %v1896_v2  ;;  %v1902_v5 = vld [vmem:[#allocation5 + $0x130] sm:$0xf]  ;;  %v2069_v6 = vld [vmem:[#allocation5 + $0x148] sm:$0xf0]  ;;  %v1009_v62 = vld [vmem:[%s2474_s16] sm:$0xff]  ;;  %s2224_s16 = smov [#allocation8]  }
 0x2ef   :  { %v856_v8 = vmax.f32 %v854_v7, 0.0  ;;  %v1802_v7 = vld [vmem:[#allocation5 + $0x78] sm:$0xf]  ;;  %v1014_v0 = vperm.slane %v1009_v62, 3  ;;  %s1436_s17 = sshll.u32 %s2224_s16, 4  ;;  %s1437_s17 = int_to_ptr.vmem [resolvable:$true] %s1436_s17 }
 0x2f0   :  { %1355 = vmatpush.bf16.msrb.mxu0 %v1863_v12  ;;  %1331 = vmatpush.bf16.msrb.mxu2 %v1799_v13  ;;  %v2061_v12 = vld [vmem:[#allocation5 + $0x108] sm:$0xf0]  ;;  %v2058_v13 = vld [vmem:[#allocation5 + $0xf4] sm:$0xf] }
 0x2f1   :  { %1718 = vmatmul.msk.f32.vlgmr.msra.gmra.mxu3 %vm786_vm3, %v856_v8  ;;  %v2046_v8 = vld [vmem:[#allocation5 + $0x90] sm:$0xf0]  ;;  %1367 = vmatpush.bf16.msrb.mxu1 %v1895_v3  ;;  %v1867_v15 = vor.u32 %v2061_v12, %v1866_v10 }
 0x2f2   :  { %v1803_v14 = vor.u32 %v2046_v8, %v1802_v7  ;;  %v1903_v7 = vor.u32 %v2069_v6, %v1902_v5  ;;  %v2029_v8 = vld [vmem:[#allocation5 + $0xc] sm:$0xf]  ;;  %v1012_v5 = vperm.slane %v1009_v62, 1  ;;  %v1013_v6 = vperm.slane %v1009_v62, 2 }
 0x2f3   :  { %v1751_v11 = vor.u32 %v2029_v8, %v1748_v9 }
 0x2f4   :  { %1344 = vmatpush.bf16.msrb.mxu3 %v1803_v14  ;;  %1356 = vmatpush.bf16.msrb.mxu0 %v1835_v25  ;;  %v1868_v14 = vld [vmem:[#allocation5 + $0x10c] sm:$0xf0]  ;;  %v1846_v25 = vld [vmem:[#allocation5 + $0xc0] sm:$0xf] }
 0x2f5   :  { %1332 = vmatpush.bf16.msrb.mxu2 %v1771_v26  ;;  %v1871_v16 = vor.u32 %v2058_v13, %v1868_v14  ;;  %1368 = vmatpush.bf16.msrb.mxu1 %v1867_v15  ;;  %v2055_v26 = vld [vmem:[#allocation5 + $0xd8] sm:$0xf0]  ;;  %v1015_v15 = vperm.slane %v1009_v62, 4 }
 0x2f6   :  { %v1847_v28 = vor.u32 %v2055_v26, %v1846_v25 }
 0x2f8   :  { %1345 = vmatpush.bf16.msrb.mxu3 %v1775_v27  ;;  %1357 = vmatpush.bf16.msrb.mxu0 %v1807_v43  ;;  %v1843_v27 = vor.u32 %v2051_v22, %v1840_v24  ;;  %v2041_v43 = vld [vmem:[#allocation5 + $0x68] sm:$0xf0]  ;;  %v1016_v22 = vperm.slane %v1009_v62, 5 }
 0x2f9   :  { %1333 = vmatpush.bf16.msrb.mxu2 %v1743_v45  ;;  %v1787_v45 = vor.u32 %v2037_v40, %v1784_v41 }
 0x2fc   :  { %1346 = vmatpush.bf16.msrb.mxu3 %v1747_v46  ;;  %1358 = vmatpush.bf16.msrb.mxu0 %v1779_v63  ;;  %v1791_v46 = vor.u32 %v2041_v43, %v1790_v42  ;;  %v1011_v63 = vperm.slane %v1009_v62, 0 }
 0x2fd   :  { %1378 = vmatpush.bf16.msra.mxu2 %v1955_v49  ;;  %v2030_v49 = vld [vmem:[#allocation5 + $0x14] sm:$0xf] }
 0x300   :  { %1391 = vmatpush.bf16.msra.mxu3 %v1959_v50  ;;  %1359 = vmatpush.bf16.msrb.mxu0 %v1751_v11  ;;  %v1756_v50 = vld [vmem:[#allocation5 + $0x2c] sm:$0xf0] }
 0x301   :  { %1379 = vmatpush.bf16.msra.mxu2 %v1927_v58  ;;  %v1759_v54 = vor.u32 %v2030_v49, %v1756_v50 }
 0x304   :  { %1392 = vmatpush.bf16.msra.mxu3 %v1931_v59 }
 0x305   :  { %1380 = vmatpush.bf16.msra.mxu2 %v1899_v4 }
 0x308   :  { %1393 = vmatpush.bf16.msra.mxu3 %v1903_v7 }
 0x309   :  { %1381 = vmatpush.bf16.msra.mxu2 %v1871_v16 }
 0x30c   :  { %1394 = vmatpush.bf16.msra.mxu3 %v1875_v19 }
 0x30d   :  { %1382 = vmatpush.bf16.msra.mxu2 %v1843_v27 }
 0x310   :  { %1395 = vmatpush.bf16.msra.mxu3 %v1847_v28 }
 0x374   :  { %v886_v31 = vpop.f32.mrf.mxu3 }
 0x375   :  { %v887_v35 = vadd.f32 %v2097_v21, %v886_v31  ;;  %v2054_v21 = vld [vmem:[#allocation5 + $0xd0] sm:$0xf0]  ;;  %v2044_v31 = vld [vmem:[#allocation5 + $0x84] sm:$0xf] }
 0x376   :  { %v1839_v23 = vor.u32 %v2054_v21, %v1838_v20  ;;  %v1815_v36 = vor.u32 %v2044_v31, %v1812_v33 }
 0x377   :  { %v889_v44 = vmax.f32 %v887_v35, 0.0  ;;  %v2048_v35 = vld [vmem:[#allocation5 + $0xa0] sm:$0xf0] }
 0x378   :  { %1369 = vmatpush.bf16.msrb.mxu1 %v1839_v23  ;;  %v1819_v37 = vor.u32 %v2048_v35, %v1818_v34  ;;  %1383 = vmatpush.bf16.msra.mxu2 %v1815_v36  ;;  %v1017_v23 = vperm.slane %v1009_v62, 6 }
 0x379   :  { %v890_v48 = vpack.c.bf16 %v889_v44, %v889_v44  ;;  %v1783_v44 = vor.u32 %v2040_v39, %v1782_v38 }
 0x37a   :  { %1396 = vmatpush.bf16.msra.mxu3 %v1819_v37 }
 0x37b   :  { %1735 = vmatmul.msk.bf16.vlgmr.msra.gmra.mxu0 %vm762_vm1, %v890_v48  ;;  %v2033_v48 = vld [vmem:[#allocation5 + $0x28] sm:$0xf0] }
 0x37c   :  { %1370 = vmatpush.bf16.msrb.mxu1 %v1811_v32  ;;  %v1755_v53 = vor.u32 %v2033_v48, %v1754_v47  ;;  %1384 = vmatpush.bf16.msra.mxu2 %v1787_v45 }
 0x37e   :  { %1397 = vmatpush.bf16.msra.mxu3 %v1791_v46 }
 0x380   :  { %1371 = vmatpush.bf16.msrb.mxu1 %v1783_v44  ;;  %1385 = vmatpush.bf16.msra.mxu2 %v1759_v54 }
 0x382   :  { %1398 = vmatpush.bf16.msra.mxu3 %v1763_v55 }
 0x384   :  { %1372 = vmatpush.bf16.msrb.mxu1 %v1755_v53 }
 0x3f8   :  { %v939_v57 = vpop.f32.mrf.mxu0 }
 0x3f9   :  { %v940_v58 = vadd.f32 %v2098_v56, %v939_v57 }
 0x3fb   :  { %v943_v59 = vmax.f32 %v940_v58, 0.0 }
 0x3fd   :  { %v944_v60 = vpack.c.bf16 %v943_v59, %v943_v59 }
 0x3ff   :  { %1321 = vmatmul.bf16.vlgmr.msra.gmra.mxu1 %v944_v60  ;;  %1334 = vmatmul.bf16.vlgmr.msrb.gmra.mxu2 %v944_v60 }
 0x400   :  { %1347 = vmatmul.bf16.vlgmr.msrb.gmra.mxu3 %v944_v60  ;;  %1360 = vmatmul.bf16.vlgmr.msrb.gmra.mxu0 %v944_v60  ;;  %v941_v61 = vpop.f32.mrf.mxu0 }
 0x40f   :  { %1373 = vmatmul.bf16.vlgmr.msrb.gmra.mxu1 %v944_v60  ;;  %1386 = vmatmul.bf16.vlgmr.msra.gmra.mxu2 %v944_v60 }
 0x410   :  { %1399 = vmatmul.bf16.vlgmr.msra.gmra.mxu3 %v944_v60 }
 0x47c   :  { %v1322_v1 = vpop.f32.mrf.mxu1 }
 0x47d   :  { %v1323_v2 = vadd.f32 %v1322_v1, %v1011_v63  ;;  %v1361_v3 = vpop.f32.mrf.mxu0 }
 0x47e   :  { %v1362_v4 = vadd.f32 %v1361_v3, %v1014_v0 }
 0x47f   :  { %2099 = vtanh.f32 %v1323_v2 }
 0x480   :  { %2101 = vtanh.f32 %v1362_v4 }
 0x482   :  { %v1335_v7 = vpop.f32.mrf.mxu2 }
 0x483   :  { %v1336_v8 = vadd.f32 %v1335_v7, %v1012_v5  ;;  %v1348_v9 = vpop.f32.mrf.mxu3 }
 0x484   :  { %v1349_v10 = vadd.f32 %v1348_v9, %v1013_v6  ;;  %v1324_v11 = vpop.f32.mrf.mxu1 }
 0x485   :  { %v2100_v12 = vpop.eup %2099  ;;  %2103 = vtanh.f32 %v1336_v8  ;;  %v1363_v13 = vpop.f32.mrf.mxu0 }
 0x486   :  { %v2102_v14 = vpop.eup %2101  ;;  %1411 = vst [vmem:[#allocation8] sm:$0xff] %v2100_v12  ;;  %2105 = vtanh.f32 %v1349_v10 }
 0x487   :  { %1414 = vst [vmem:[#allocation8 + $0x18] sm:$0xff] %v2102_v14 }
 0x48a   :  { %v1337_v16 = vpop.f32.mrf.mxu2 }
 0x48b   :  { %v2104_v17 = vpop.eup %2103  ;;  %v1350_v18 = vpop.f32.mrf.mxu3 }
 0x48c   :  { %v2106_v19 = vpop.eup %2105  ;;  %1412 = vst [vmem:[#allocation8 + $0x8] sm:$0xff] %v2104_v17  ;;  %v1374_v20 = vpop.f32.mrf.mxu1 }
 0x48d   :  { %1413 = vst [vmem:[#allocation8 + $0x10] sm:$0xff] %v2106_v19  ;;  %v1375_v21 = vadd.f32 %v1374_v20, %v1015_v15 }
 0x48f   :  { %2107 = vtanh.f32 %v1375_v21 }
 0x492   :  { %v1387_v24 = vpop.f32.mrf.mxu2 }
 0x493   :  { %v1388_v25 = vadd.f32 %v1387_v24, %v1016_v22  ;;  %v1400_v26 = vpop.f32.mrf.mxu3 }
 0x494   :  { %v1401_v27 = vadd.f32 %v1400_v26, %v1017_v23  ;;  %v1376_v28 = vpop.f32.mrf.mxu1 }
 0x495   :  { %v2108_v29 = vpop.eup %2107  ;;  %2109 = vtanh.f32 %v1388_v25 }
 0x496   :  { %1415 = vst [vmem:[#allocation8 + $0x20] sm:$0xff] %v2108_v29  ;;  %2111 = vtanh.f32 %v1401_v27 }
 0x49a   :  { %v1389_v30 = vpop.f32.mrf.mxu2 }
 0x49b   :  { %v2110_v31 = vpop.eup %2109  ;;  %v1402_v32 = vpop.f32.mrf.mxu3 }
 0x49c   :  { %v2112_v33 = vpop.eup %2111  ;;  %1416 = vst [vmem:[#allocation8 + $0x28] sm:$0xff] %v2110_v31 }
 0x49d   :  { %1417 = vst [vmem:[#allocation8 + $0x30] sm:$0xff] %v2112_v33 }
 0x49e   :  { %1441 = dma.vmem_to_hbm [thread:$0]  %s1437_s17, 896, %s1439_s9, [#allocation9]  }
 0x49f   :  { %2213 = dma.done.wait [#allocation4], 128  }
 0x4a0   :  { %2214 = vsyncadd [#allocation4], 4294967168 }
 0x4a1   :  { %2215 = dma.done.wait [#allocation9], 896  }
 0x4a2   :  { %2216 = vsyncadd [#allocation9], 4294966400 }
 0x4a3   :  { %1452 = vsyncpa [#allocation3], 1 }
 0x4a4   :  { %1453 = vsyncpa [#allocation6], 1 }
 0x4a5   :  { %1454 = vsyncpa [#allocation4], 1 }
 0x4a6   :  { %1455 = vsyncpa [#allocation9], 1 }

</bundles_post_ra>
